<compile_context>
chip_gen: v7x
topology: tpu7x:2x2x1
jax: 0.10.0
libtpu: 0.0.40
codegen_flags: <defaults>
</compile_context>

<pallas_src>
import math
import jax
import jax.numpy as jnp
from jax.experimental import pallas as pl
from jax.experimental.pallas import tpu as pltpu

H1 = 256         # hidden width of input_layer / hidden1
H2 = 128         # hidden width of hidden2 (folded away inside the kernel)
E_PAD = 128      # lane-dense padded expert dimension
LN_EPS = 1e-5
NEG_BIG = -1e30  # padded-expert bias -> exp underflows to exactly 0
TB_MIN = 16      # bf16 sublane packing: (16, 128) tiles


def _round_up(n, m):
    return ((n + m - 1) // m) * m


def _layernorm(h):
    # nn.LayerNorm (gamma=1, beta=0 at init), f32, single-pass variance:
    # both lane reductions (sum h, sum h*h) issue back-to-back on the XLU and
    # the (h - mu) tensor is reused for the normalize multiply.
    mu = jnp.mean(h, axis=-1, keepdims=True)
    var = jnp.mean(h * h, axis=-1, keepdims=True) - mu * mu
    return (h - mu) * jax.lax.rsqrt(var + LN_EPS)


def gating_kernel(temp_ref,                 # SMEM (1,): temperature
                  x_ref,                    # (TB, input_dim)   bf16
                  w_in_ref, b_in_ref,       # (input_dim, 256) bf16, (1, 256) f32
                  w1_ref, b1_ref,           # (256, 256) bf16,       (1, 256) f32
                  w2o_ref, b2o_ref,         # (256, 128) bf16 folded, (1, 128) f32 (-1e30 pad)
                  probs_ref):               # out: (TB, 128) bf16 softmax probs
    inv_temp = 1.0 / temp_ref[0]            # one scalar recip per tile

    x = x_ref[...]                          # bf16 tile

    # h0 = relu(input_layer(x))             (f32 accumulate)
    h0 = jnp.maximum(
        jnp.dot(x, w_in_ref[...], preferred_element_type=jnp.float32)
        + b_in_ref[...], 0.0)

    # h1 = hidden1(h0) + h0  (LayerNorm -> ReLU -> Dropout(eval=id) -> Linear)
    a1 = jnp.maximum(_layernorm(h0), 0.0).astype(jnp.bfloat16)
    h1 = (jnp.dot(a1, w1_ref[...], preferred_element_type=jnp.float32)
          + b1_ref[...] + h0)

    # Folded hidden2 + output_layer:
    #   logits = relu(LN(h1)) @ (W2 @ W_out) + (b2 @ W_out + b_out)
    # (no activation between hidden2's Linear and output_layer in the ref).
    # Padded expert lanes carry bias -1e30 -> exp() underflows to exactly 0.
    a2 = jnp.maximum(_layernorm(h1), 0.0).astype(jnp.bfloat16)
    logits = (jnp.dot(a2, w2o_ref[...], preferred_element_type=jnp.float32)
              + b2o_ref[...]) * inv_temp

    # softmax over the (padded) expert lanes, f32; stored bf16 (lane-dense vst)
    m = jnp.max(logits, axis=-1, keepdims=True)
    e = jnp.exp(logits - m)
    inv_sum = pl.reciprocal(jnp.sum(e, axis=-1, keepdims=True), approx=True)
    probs_ref[...] = (e * inv_sum).astype(probs_ref.dtype)


def _xavier_uniform(key, fan_in, fan_out, gain):
    bound = gain * math.sqrt(6.0 / (fan_in + fan_out))
    # stored as (in, out) so the kernel computes x @ W
    return jax.random.uniform(key, (fan_in, fan_out), jnp.float32, -bound, bound)


def init_params(key, input_dim, num_experts):
    assert num_experts <= E_PAD
    k0, k1, k2, k3 = jax.random.split(key, 4)

    # f32 "PyTorch-equivalent" parameters
    w_in = _xavier_uniform(k0, input_dim, H1, gain=0.5)
    b_in = jnp.zeros((1, H1), jnp.float32)
    w1 = _xavier_uniform(k1, H1, H1, gain=0.5)
    b1 = jnp.full((1, H1), 0.1, jnp.float32)
    w2 = _xavier_uniform(k2, H1, H2, gain=0.5)
    b2 = jnp.full((1, H2), 0.1, jnp.float32)
    w_out = _xavier_uniform(k3, H2, num_experts, gain=0.1)
    b_out = jnp.zeros((1, num_experts), jnp.float32)

    # Pad output layer to 128 lane-dense expert lanes.
    w_out_pad = jnp.zeros((H2, E_PAD), jnp.float32).at[:, :num_experts].set(w_out)
    b_out_pad = jnp.full((1, E_PAD), NEG_BIG, jnp.float32).at[:, :num_experts].set(b_out)

    # Fold hidden2's Linear and output_layer into one matmul (f32 product).
    w2out = w2 @ w_out_pad                       # (256, 128); padded cols are 0
    b2out = b2 @ w_out_pad + b_out_pad           # (1, 128); padded lanes = -1e30

    return {
        # kernel operands (matmul weights stored bf16: MXU fast path, half DMA)
        "w_in": w_in.astype(jnp.bfloat16),
        "b_in": b_in,
        "w1": w1.astype(jnp.bfloat16),
        "b1": b1,
        "w2out": w2out.astype(jnp.bfloat16),
        "b2out": b2out,
        "temperature": jnp.ones((1,), jnp.float32),
        # unfolded f32 originals, kept only for the pure-JAX reference check
        "ref": {"w_in": w_in, "b_in": b_in, "w1": w1, "b1": b1,
                "w2": w2, "b2": b2, "w_out": w_out, "b_out": b_out},
    }


def gating_forward(params, x, num_experts, top_k, block_b=1024):
    B, D = x.shape

    # Batch tile: multiple of 16 (bf16 sublane packing), capped at block_b.
    B_ceil = _round_up(B, TB_MIN)
    TB = min(block_b, B_ceil)
    if B_ceil > TB_MIN:
        # v7x megacore: guarantee >= 2 batch tiles so ("parallel",) actually
        # shards work across both TensorCores (no-op cost on v5e/v6e).
        TB = min(TB, _round_up(-(-B_ceil // 2), TB_MIN))
    TB = max(_round_up(TB, TB_MIN), TB_MIN)

    B_pad = _round_up(B, TB)
    x_p = x.astype(jnp.bfloat16)
    if B_pad != B:
        x_p = jnp.pad(x_p, ((0, B_pad - B), (0, 0)))   # zero rows, sliced off
    grid = (B_pad // TB,)

    def resident(shape):
        # same block every grid step -> stays resident in VMEM (no re-DMA)
        return pl.BlockSpec(shape, lambda i: (0, 0))

    matmul_flops = 2 * (D * H1 + H1 * H1 + H1 * E_PAD)
    weight_bytes = 2 * (D * H1 + H1 * H1 + H1 * E_PAD)          # bf16
    bias_bytes = 4 * (H1 + H1 + E_PAD) + 4
    cost = pl.CostEstimate(
        flops=B_pad * matmul_flops,
        transcendentals=B_pad * (E_PAD + 3),
        bytes_accessed=B_pad * D * 2 + weight_bytes + bias_bytes
                       + B_pad * E_PAD * 2,                      # bf16 out
    )

    probs_pad = pl.pallas_call(
        gating_kernel,
        out_shape=jax.ShapeDtypeStruct((B_pad, E_PAD), jnp.bfloat16),
        grid=grid,
        in_specs=[
            pl.BlockSpec(memory_space=pltpu.MemorySpace.SMEM),   # temperature
            pl.BlockSpec((TB, D), lambda i: (i, 0)),             # x batch tile
            resident((D, H1)), resident((1, H1)),                # input_layer
            resident((H1, H1)), resident((1, H1)),               # hidden1 linear
            resident((H1, E_PAD)), resident((1, E_PAD)),         # folded h2+out
        ],
        out_specs=pl.BlockSpec((TB, E_PAD), lambda i: (i, 0)),
        compiler_params=pltpu.CompilerParams(
            dimension_semantics=("parallel",)),                  # v7x: 2 TCs
        cost_estimate=cost,
    )(params["temperature"], x_p,
      params["w_in"], params["b_in"],
      params["w1"], params["b1"],
      params["w2out"], params["b2out"])

    gate_probs = probs_pad[:B, :num_experts].astype(jnp.float32)

    # Top-k selection + renormalization (tiny B x E glue, plain JAX, f32).
    k = min(top_k, num_experts)
    top_k_probs, top_k_indices = jax.lax.top_k(gate_probs, k)
    top_k_probs = top_k_probs / jnp.sum(top_k_probs, axis=1, keepdims=True)
    return top_k_probs, top_k_indices.astype(jnp.int32), gate_probs


def _reference_forward(ref, temperature, x):
    # Pure-JAX f32 reference of the original (unfolded) module, eval mode.
    def ln(h):
        mu = jnp.mean(h, -1, keepdims=True)
        var = jnp.mean((h - mu) ** 2, -1, keepdims=True)
        return (h - mu) / jnp.sqrt(var + LN_EPS)

    h0 = jax.nn.relu(x @ ref["w_in"] + ref["b_in"])
    h1 = jax.nn.relu(ln(h0)) @ ref["w1"] + ref["b1"] + h0
    h2 = jax.nn.relu(ln(h1)) @ ref["w2"] + ref["b2"]
    logits = (h2 @ ref["w_out"] + ref["b_out"]) / temperature
    return jax.nn.softmax(logits, axis=-1)


if __name__ == "__main__":
    key = jax.random.PRNGKey(0)
    k_param, k_x = jax.random.split(key)

    batch, input_dim, num_experts, top_k = 40, 32, 8, 4
    params = init_params(k_param, input_dim, num_experts)
    # padded -1e30 bias stays finite only for sane positive temperatures
    assert float(params["temperature"][0]) > 1e-6

    x = jax.random.normal(k_x, (batch, input_dim), jnp.float32)

    # With batch=40, TB is capped at 32 -> grid=(2,), exercising the
    # multi-tile pipeline, resident-weight index maps and the padding path.
    top_k_probs, top_k_indices, gate_probs = jax.block_until_ready(
        gating_forward(params, x, num_experts, top_k))

    assert top_k_probs.shape == (batch, top_k)
    assert top_k_indices.shape == (batch, top_k)
    assert gate_probs.shape == (batch, num_experts)
    assert bool(jnp.all(jnp.isfinite(gate_probs)))
    # gate_probs are stored bf16 -> relaxed sum-to-one tolerance
    assert bool(jnp.allclose(jnp.sum(gate_probs, axis=1), 1.0, atol=2e-2))
    # top-k renorm is f32 -> tight tolerance
    assert bool(jnp.allclose(jnp.sum(top_k_probs, axis=1), 1.0, atol=1e-5))
    assert bool(jnp.all(top_k_indices >= 0)) and bool(
        jnp.all(top_k_indices < num_experts))

    # Cross-check against the unfolded pure-JAX f32 reference (bf16 weights /
    # activations / output storage -> loose tolerance).
    ref_probs = _reference_forward(params["ref"], params["temperature"], x)
    assert float(jnp.max(jnp.abs(gate_probs - ref_probs))) < 5e-2

    print("KERNEL_OK")
</pallas_src>

<mosaic_0001>
module attributes {stable_mosaic.version = 11 : i64} {
  func.func @gating_kernel(%arg0: i32, %arg1: memref<1xf32, #tpu.memory_space<smem>>, %arg2: memref<32x32xbf16, #tpu.memory_space<vmem>>, %arg3: memref<32x256xbf16, #tpu.memory_space<vmem>>, %arg4: memref<1x256xf32, #tpu.memory_space<vmem>>, %arg5: memref<256x256xbf16, #tpu.memory_space<vmem>>, %arg6: memref<1x256xf32, #tpu.memory_space<vmem>>, %arg7: memref<256x128xbf16, #tpu.memory_space<vmem>>, %arg8: memref<1x128xf32, #tpu.memory_space<vmem>>, %arg9: memref<32x128xbf16, #tpu.memory_space<vmem>>) attributes {dimension_semantics = [#tpu.dimension_semantics<parallel>], iteration_bounds = array<i64: 2>, scalar_prefetch = 0 : i64, scratch_operands = 0 : i64, tpu.core_type = #tpu.core_type<tc>, window_params = [{transform_indices = @transform_0, window_bounds = array<i64: 1>}, {transform_indices = @transform_1, window_bounds = array<i64: 32, 32>}, {pipeline_mode = #tpu.pipeline_mode<synchronous>, transform_indices = @transform_2, window_bounds = array<i64: 32, 256>}, {pipeline_mode = #tpu.pipeline_mode<synchronous>, transform_indices = @transform_3, window_bounds = array<i64: 1, 256>}, {pipeline_mode = #tpu.pipeline_mode<synchronous>, transform_indices = @transform_4, window_bounds = array<i64: 256, 256>}, {pipeline_mode = #tpu.pipeline_mode<synchronous>, transform_indices = @transform_5, window_bounds = array<i64: 1, 256>}, {pipeline_mode = #tpu.pipeline_mode<synchronous>, transform_indices = @transform_6, window_bounds = array<i64: 256, 128>}, {pipeline_mode = #tpu.pipeline_mode<synchronous>, transform_indices = @transform_7, window_bounds = array<i64: 1, 128>}, {transform_indices = @transform_8, window_bounds = array<i64: 32, 128>}]} {
    %c0 = arith.constant 0 : index
    %0 = memref.load %arg1[%c0] : memref<1xf32, #tpu.memory_space<smem>>
    %cst = arith.constant 1.000000e+00 : f32
    %1 = arith.divf %cst, %0 : f32
    %c0_0 = arith.constant 0 : index
    %c0_1 = arith.constant 0 : index
    %2 = vector.load %arg2[%c0_0, %c0_1] : memref<32x32xbf16, #tpu.memory_space<vmem>>, vector<32x32xbf16>
    %c0_2 = arith.constant 0 : index
    %c0_3 = arith.constant 0 : index
    %3 = vector.load %arg3[%c0_2, %c0_3] : memref<32x256xbf16, #tpu.memory_space<vmem>>, vector<32x256xbf16>
    %cst_4 = arith.constant dense<0.000000e+00> : vector<32x256xf32>
    %4 = tpu.matmul %2, %3, %cst_4 {dimension_numbers = #tpu.dot_dimension_numbers<[1], [0], [0], [1], [0, 0, 1, 1], [], []>} : vector<32x32xbf16>, vector<32x256xbf16>, vector<32x256xf32> -> vector<32x256xf32>
    %c0_5 = arith.constant 0 : index
    %c0_6 = arith.constant 0 : index
    %5 = vector.load %arg4[%c0_5, %c0_6] : memref<1x256xf32, #tpu.memory_space<vmem>>, vector<1x256xf32>
    %6 = vector.broadcast %5 : vector<1x256xf32> to vector<32x256xf32>
    %7 = arith.addf %4, %6 : vector<32x256xf32>
    %cst_7 = arith.constant 0.000000e+00 : f32
    %8 = vector.broadcast %cst_7 : f32 to vector<32x256xf32>
    %9 = arith.maximumf %7, %8 : vector<32x256xf32>
    %cst_8 = arith.constant dense<0.000000e+00> : vector<32xf32>
    %10 = vector.multi_reduction <add>, %9, %cst_8 [1] : vector<32x256xf32> to vector<32xf32>
    %11 = vector.shape_cast %10 : vector<32xf32> to vector<32x1xf32>
    %cst_9 = arith.constant 2.560000e+02 : f32
    %12 = vector.broadcast %cst_9 : f32 to vector<32x1xf32>
    %13 = arith.divf %11, %12 : vector<32x1xf32>
    %14 = arith.mulf %9, %9 : vector<32x256xf32>
    %cst_10 = arith.constant dense<0.000000e+00> : vector<32xf32>
    %15 = vector.multi_reduction <add>, %14, %cst_10 [1] : vector<32x256xf32> to vector<32xf32>
    %16 = vector.shape_cast %15 : vector<32xf32> to vector<32x1xf32>
    %cst_11 = arith.constant 2.560000e+02 : f32
    %17 = vector.broadcast %cst_11 : f32 to vector<32x1xf32>
    %18 = arith.divf %16, %17 : vector<32x1xf32>
    %19 = arith.mulf %13, %13 : vector<32x1xf32>
    %20 = arith.subf %18, %19 : vector<32x1xf32>
    %21 = vector.broadcast %13 : vector<32x1xf32> to vector<32x256xf32>
    %22 = arith.subf %9, %21 : vector<32x256xf32>
    %cst_12 = arith.constant 9.99999974E-6 : f32
    %23 = vector.broadcast %cst_12 : f32 to vector<32x1xf32>
    %24 = arith.addf %20, %23 : vector<32x1xf32>
    %25 = math.rsqrt %24 : vector<32x1xf32>
    %26 = vector.broadcast %25 : vector<32x1xf32> to vector<32x256xf32>
    %27 = arith.mulf %22, %26 : vector<32x256xf32>
    %cst_13 = arith.constant 0.000000e+00 : f32
    %28 = vector.broadcast %cst_13 : f32 to vector<32x256xf32>
    %29 = arith.maximumf %27, %28 : vector<32x256xf32>
    %30 = arith.truncf %29 : vector<32x256xf32> to vector<32x256xbf16>
    %c0_14 = arith.constant 0 : index
    %c0_15 = arith.constant 0 : index
    %31 = vector.load %arg5[%c0_14, %c0_15] : memref<256x256xbf16, #tpu.memory_space<vmem>>, vector<256x256xbf16>
    %cst_16 = arith.constant dense<0.000000e+00> : vector<32x256xf32>
    %32 = tpu.matmul %30, %31, %cst_16 {dimension_numbers = #tpu.dot_dimension_numbers<[1], [0], [0], [1], [0, 0, 1, 1], [], []>} : vector<32x256xbf16>, vector<256x256xbf16>, vector<32x256xf32> -> vector<32x256xf32>
    %c0_17 = arith.constant 0 : index
    %c0_18 = arith.constant 0 : index
    %33 = vector.load %arg6[%c0_17, %c0_18] : memref<1x256xf32, #tpu.memory_space<vmem>>, vector<1x256xf32>
    %34 = vector.broadcast %33 : vector<1x256xf32> to vector<32x256xf32>
    %35 = arith.addf %32, %34 : vector<32x256xf32>
    %36 = arith.addf %35, %9 : vector<32x256xf32>
    %cst_19 = arith.constant dense<0.000000e+00> : vector<32xf32>
    %37 = vector.multi_reduction <add>, %36, %cst_19 [1] : vector<32x256xf32> to vector<32xf32>
    %38 = vector.shape_cast %37 : vector<32xf32> to vector<32x1xf32>
    %cst_20 = arith.constant 2.560000e+02 : f32
    %39 = vector.broadcast %cst_20 : f32 to vector<32x1xf32>
    %40 = arith.divf %38, %39 : vector<32x1xf32>
    %41 = arith.mulf %36, %36 : vector<32x256xf32>
    %cst_21 = arith.constant dense<0.000000e+00> : vector<32xf32>
    %42 = vector.multi_reduction <add>, %41, %cst_21 [1] : vector<32x256xf32> to vector<32xf32>
    %43 = vector.shape_cast %42 : vector<32xf32> to vector<32x1xf32>
    %cst_22 = arith.constant 2.560000e+02 : f32
    %44 = vector.broadcast %cst_22 : f32 to vector<32x1xf32>
    %45 = arith.divf %43, %44 : vector<32x1xf32>
    %46 = arith.mulf %40, %40 : vector<32x1xf32>
    %47 = arith.subf %45, %46 : vector<32x1xf32>
    %48 = vector.broadcast %40 : vector<32x1xf32> to vector<32x256xf32>
    %49 = arith.subf %36, %48 : vector<32x256xf32>
    %cst_23 = arith.constant 9.99999974E-6 : f32
    %50 = vector.broadcast %cst_23 : f32 to vector<32x1xf32>
    %51 = arith.addf %47, %50 : vector<32x1xf32>
    %52 = math.rsqrt %51 : vector<32x1xf32>
    %53 = vector.broadcast %52 : vector<32x1xf32> to vector<32x256xf32>
    %54 = arith.mulf %49, %53 : vector<32x256xf32>
    %cst_24 = arith.constant 0.000000e+00 : f32
    %55 = vector.broadcast %cst_24 : f32 to vector<32x256xf32>
    %56 = arith.maximumf %54, %55 : vector<32x256xf32>
    %57 = arith.truncf %56 : vector<32x256xf32> to vector<32x256xbf16>
    %c0_25 = arith.constant 0 : index
    %c0_26 = arith.constant 0 : index
    %58 = vector.load %arg7[%c0_25, %c0_26] : memref<256x128xbf16, #tpu.memory_space<vmem>>, vector<256x128xbf16>
    %cst_27 = arith.constant dense<0.000000e+00> : vector<32x128xf32>
    %59 = tpu.matmul %57, %58, %cst_27 {dimension_numbers = #tpu.dot_dimension_numbers<[1], [0], [0], [1], [0, 0, 1, 1], [], []>} : vector<32x256xbf16>, vector<256x128xbf16>, vector<32x128xf32> -> vector<32x128xf32>
    %c0_28 = arith.constant 0 : index
    %c0_29 = arith.constant 0 : index
    %60 = vector.load %arg8[%c0_28, %c0_29] : memref<1x128xf32, #tpu.memory_space<vmem>>, vector<1x128xf32>
    %61 = vector.broadcast %60 : vector<1x128xf32> to vector<32x128xf32>
    %62 = arith.addf %59, %61 : vector<32x128xf32>
    %63 = vector.broadcast %1 : f32 to vector<32x128xf32>
    %64 = arith.mulf %62, %63 : vector<32x128xf32>
    %cst_30 = arith.constant dense<0xFF800000> : vector<32xf32>
    %65 = vector.multi_reduction <maximumf>, %64, %cst_30 [1] : vector<32x128xf32> to vector<32xf32>
    %66 = vector.shape_cast %65 : vector<32xf32> to vector<32x1xf32>
    %67 = vector.broadcast %66 : vector<32x1xf32> to vector<32x128xf32>
    %68 = arith.subf %64, %67 : vector<32x128xf32>
    %69 = math.exp %68 : vector<32x128xf32>
    %cst_31 = arith.constant dense<0.000000e+00> : vector<32xf32>
    %70 = vector.multi_reduction <add>, %69, %cst_31 [1] : vector<32x128xf32> to vector<32xf32>
    %71 = vector.shape_cast %70 : vector<32xf32> to vector<32x1xf32>
    %72 = tpu.reciprocal %71 {approx = true} : vector<32x1xf32> -> vector<32x1xf32>
    %73 = vector.broadcast %72 : vector<32x1xf32> to vector<32x128xf32>
    %74 = arith.mulf %69, %73 : vector<32x128xf32>
    %75 = arith.truncf %74 : vector<32x128xf32> to vector<32x128xbf16>
    %c0_32 = arith.constant 0 : index
    %c0_33 = arith.constant 0 : index
    %76 = vector.load %arg9[%c0_32, %c0_33] : memref<32x128xbf16, #tpu.memory_space<vmem>>, vector<32x128xbf16>
    tpu.vector_store %arg9[%c0_32, %c0_33], %75 {strides = array<i32>} : memref<32x128xbf16, #tpu.memory_space<vmem>>, vector<32x128xbf16>,
    return
  }
  func.func @transform_0(%arg0: i32) -> i32 {
    %c0_i32 = arith.constant 0 : i32
    %c0_i32_0 = arith.constant 0 : i32
    return %c0_i32 : i32
  }
  func.func @transform_1(%arg0: i32) -> (i32, i32) {
    %c0_i32 = arith.constant 0 : i32
    %c0_i32_0 = arith.constant 0 : i32
    return %arg0, %c0_i32 : i32, i32
  }
  func.func @transform_2(%arg0: i32) -> (i32, i32) {
    %c0_i32 = arith.constant 0 : i32
    %c0_i32_0 = arith.constant 0 : i32
    %c0_i32_1 = arith.constant 0 : i32
    return %c0_i32, %c0_i32_0 : i32, i32
  }
  func.func @transform_3(%arg0: i32) -> (i32, i32) {
    %c0_i32 = arith.constant 0 : i32
    %c0_i32_0 = arith.constant 0 : i32
    %c0_i32_1 = arith.constant 0 : i32
    return %c0_i32, %c0_i32_0 : i32, i32
  }
  func.func @transform_4(%arg0: i32) -> (i32, i32) {
    %c0_i32 = arith.constant 0 : i32
    %c0_i32_0 = arith.constant 0 : i32
    %c0_i32_1 = arith.constant 0 : i32
    return %c0_i32, %c0_i32_0 : i32, i32
  }
  func.func @transform_5(%arg0: i32) -> (i32, i32) {
    %c0_i32 = arith.constant 0 : i32
    %c0_i32_0 = arith.constant 0 : i32
    %c0_i32_1 = arith.constant 0 : i32
    return %c0_i32, %c0_i32_0 : i32, i32
  }
  func.func @transform_6(%arg0: i32) -> (i32, i32) {
    %c0_i32 = arith.constant 0 : i32
    %c0_i32_0 = arith.constant 0 : i32
    %c0_i32_1 = arith.constant 0 : i32
    return %c0_i32, %c0_i32_0 : i32, i32
  }
  func.func @transform_7(%arg0: i32) -> (i32, i32) {
    %c0_i32 = arith.constant 0 : i32
    %c0_i32_0 = arith.constant 0 : i32
    %c0_i32_1 = arith.constant 0 : i32
    return %c0_i32, %c0_i32_0 : i32, i32
  }
  func.func @transform_8(%arg0: i32) -> (i32, i32) {
    %c0_i32 = arith.constant 0 : i32
    %c0_i32_0 = arith.constant 0 : i32
    return %arg0, %c0_i32 : i32, i32
  }
}

</mosaic_0001>

<bundles_post_ra>
// kernel: tpu_custom_call.1
= control target key start
LH: loop header
LB: loop body
LE: loop exit
PB: predicated region body
PF: predicated region fallthrough
CT: control target
= control target key end

     0   :  { %s2031_s0 = inlined_call_operand.<no memory space> [shape: f32[1], index: 0, kind: input, shape index: {}]   ;;  %s2032_s1 = inlined_call_operand.vmem [shape: bf16[64,32], index: 1, kind: input, shape index: {}]   ;;  %s2033_s2 = inlined_call_operand.vmem [shape: bf16[32,256], index: 2, kind: input, shape index: {}]   ;;  %s2034_s3 = inlined_call_operand.vmem [shape: f32[1,256], index: 3, kind: input, shape index: {}]   ;;  %s2035_s4 = inlined_call_operand.hbm [shape: bf16[256,256], index: 4, kind: input, shape index: {}]   ;;  %s2036_s5 = inlined_call_operand.vmem [shape: f32[1,256], index: 5, kind: input, shape index: {}]   ;;  %s2037_s6 = inlined_call_operand.hbm [shape: bf16[256,128], index: 6, kind: input, shape index: {}]   ;;  %s2038_s7 = inlined_call_operand.vmem [shape: f32[1,128], index: 7, kind: input, shape index: {}]   ;;  %s2039_s8 = inlined_call_operand.hbm [shape: bf16[64,128], index: 8, kind: output, shape index: {}]  }
   0x1   :  { %13 = sst [smem:[#allocation2]] %s2031_s0 }
   0x2   :  { %14 = vsyncpa [#allocation4], 0 }
   0x3   :  { %15 = vsyncpa [#allocation7], 0 }
   0x4   :  { %16 = vsyncpa [#allocation5], 0 }
   0x5   :  { %18 = vsyncpa [#allocation5 + $0x1], 0  ;;  %s1720_s29 = smov 0   ;;  %s1722_s30 = smov 0  }
   0x6   :  { %s1724_s9 = smov 0   ;;  %s1726_s10 = smov 0  }
   0x7 LB: > { %s1741_s0 = sadd.s32 4294967295, %s1660_s10   ;;  %s1238_s11 = sadd.s32 4294967294, %s1660_s10   ;;  %s1660_s10 = sphi %s1726_s10, %s2059_s10   ;;  %s1656_s9 = sphi %s1724_s9, %s2058_s9   ;;  %s1652_s30 = sphi %s1722_s30, %s2057_s30   ;;  %s1648_s29 = sphi %s1720_s29, %s2056_s29  }
   0x8   : > { %s1745_s12 = sadd.s32 1, %s1660_s10   ;;  %s204_s13 = sadd.s32 1, %s1656_s9 }
   0x9   : > { %s201_s14 = ssub.s32 %s1660_s10, %s1745_s12  ;;  %p214_p0 = scmp.ne.s32.totalorder %s1656_s9, %s1652_s30 }
   0xa   : > { %p202_p1 = scmp.eq.s32.totalorder %s201_s14, 0  ;;  %p215_p2 = scmp.eq.s32.totalorder %s1741_s0, 1 }
   0xb   : > { %p220_p3 = scmp.ne.s32.totalorder %s1652_s30, %s1648_s29  ;;  %p221_p4 = scmp.eq.s32.totalorder %s1238_s11, 1 }
   0xc   : > { %s1756_s15 = scalar_select %p202_p1, %s1656_s9, %s204_s13  }
   0xd   : > { %p1758_p5 = por %p215_p2, %p214_p0  ;;  %p1762_p6 = por %p221_p4, %p220_p3 }
   0xe   : > { %2043 = sst [smem:[#allocation12_spill]] %s1756_s15  ;;  %p1239_p7 = scmp.ge.s32.totalorder %s1660_s10, 1 }
   0xf   : > { %s2044_s16 = scalar_select %p1758_p5, 1, 0 }
  0x10   : > { %s2045_s17 = scalar_select %p1762_p6, 1, 0 }
  0x11   : > { %p228_p8 = scmp.lt.s32.totalorder %s1660_s10, 3  ;;  %p2040_p9 = scmp.eq.s32.totalorder %s1741_s0, 0 }
  0x12   : > { %s1662_s19 = smov [#allocation3]   ;;  %s1663_s22 = smov [#allocation6]  }
  0x13   : > { %p1769_p10 = pnand %p1239_p7, %p228_p8  ;;  %s249_s20 = sshll.u32 %s1662_s19, 4  ;;  %s250_s20 = int_to_ptr.vmem [resolvable:$true] %s249_s20 }
  0x14   : > { %s265_s23 = sshll.u32 %s1663_s22, 4  ;;  %s1534_s26 = scalar_lea.hbm %s2035_s4, 4096  ;;  %s1781_s23 = int_to_ptr.vmem [resolvable:$true] %s265_s23 }
  0x15   : > { %s2046_s18 = scalar_select %p1769_p10, 1, 0 }
  0x16   : > { %p1371_p11 = pneg %p1769_p10  ;;  %p1535_p13 = scmp.ne.s32.totalorder %s2035_s4, %s1534_s26 }
  0x17   : > { %p1541_p3 = scmp.lt.u32.totalorder %s1534_s26, %s2035_s4 }
  0x18   : > { %p1777_p12 = pnand %p2040_p9, %p1371_p11 }
  0x1a   : > { %p1536_p0 = pneg %p1777_p12 }
  0x1c   : > { %p1537_p1 = pnand %p1536_p0, %p1535_p13 }
  0x1e   : > { %p1538_p2 = pneg %p1537_p1 }
  0x20   : > { %p1543_p4 = pnand %p1541_p3, %p1538_p2 }
  0x22   : > { %1546 = shalt.err (!%p1543_p4)
}
  0x23   : > { %s1547_s14 = scalar_lea.vmem %s250_s20, 4096  ;;  %p1555_p9 = scmp.lt.s32.totalorder %s250_s20, %s250_s20 }
  0x24   : > { %p1548_p7 = scmp.ne.s32.totalorder %s250_s20, %s1547_s14  ;;  %p1556_p6 = scmp.lt.s32.totalorder %s1547_s14, %s1547_s14 }
  0x26   : > { %p1550_p8 = pnand %p1548_p7, %p1536_p0  ;;  %p1557_p5 = por %p1556_p6, %p1555_p9 }
  0x28   : > { %p1551_p11 = pneg %p1550_p8 }
  0x2a   : > { %p1558_p10 = pnand %p1557_p5, %p1551_p11 }
  0x2c   : > { %1561 = shalt.err (!%p1558_p10)
}
  0x2d   : > { %s1664_s19 = smov 128   ;;  %s1665_s22 = smov 8  }
  0x2e   : > { %1374 = dma.hbm_to_vmem [thread:$0]  (!%p1777_p12), %s2035_s4, 4096, %s250_s20, [#allocation4], %s1664_s19, %s1664_s19, %s1665_s22  }
  0x2f   : > { %s1562_s28 = scalar_lea.hbm %s2037_s6, 2048 }
  0x30   : > { %p1563_p13 = scmp.ne.s32.totalorder %s2037_s6, %s1562_s28  ;;  %p1569_p9 = scmp.lt.u32.totalorder %s1562_s28, %s2037_s6 }
  0x32   : > { %p1565_p5 = pnand %p1563_p13, %p1536_p0 }
  0x34   : > { %p1566_p6 = pneg %p1565_p5 }
  0x36   : > { %p1571_p10 = pnand %p1569_p9, %p1566_p6 }
  0x38   : > { %1574 = shalt.err (!%p1571_p10)
}
  0x39   : > { %s1575_s20 = scalar_lea.vmem %s1781_s23, 2048  ;;  %p1583_p4 = scmp.lt.s32.totalorder %s1781_s23, %s1781_s23 }
  0x3a   : > { %p1576_p1 = scmp.ne.s32.totalorder %s1781_s23, %s1575_s20  ;;  %p1584_p7 = scmp.lt.s32.totalorder %s1575_s20, %s1575_s20 }
  0x3c   : > { %p1578_p2 = pnand %p1576_p1, %p1536_p0  ;;  %p1585_p8 = por %p1584_p7, %p1583_p4 }
  0x3e   : > { %p1579_p3 = pneg %p1578_p2 }
  0x40   : > { %p1586_p11 = pnand %p1585_p8, %p1579_p3 }
  0x42   : > { %1589 = shalt.err (!%p1586_p11)
}
  0x43   : > { %s1666_s15 = smov 64   ;;  %s1667_s19 = smov 4  }
  0x44   : > { %1377 = dma.hbm_to_vmem [thread:$0]  (!%p1777_p12), %s2037_s6, 2048, %s1781_s23, [#allocation7], %s1666_s15, %s1666_s15, %s1667_s19  }
  0x45   : > { %p2048_p13 = scmp.ne.s32.totalorder %s2046_s18, 0 }
  0x46   : > { %p2049_p0 = scmp.eq.s32.totalorder (!%p2048_p13), %s1741_s0, 0 }
  0x47   : > { %293 = sbr.rel (%p2048_p13) target bundleno = 1431 (0x597), region = 52 }
  0x4e   : > { %1635 = dma.done.wait (%p2049_p0), [#allocation4], 4096   ;;  %p2050_p5 = pmov %p2049_p0 }
  0x4f   : > { %p2051_p6 = pmov %p2049_p0 }
  0x50   : > { %1637 = vsyncadd (%p2050_p5), [#allocation4], 4294963200 }
  0x51   : > { %1639 = dma.done.wait (%p2051_p6), [#allocation7], 2048   ;;  %p2052_p9 = pmov %p2049_p0 }
  0x52   : > { %s1247_s21 = sshll.u32 %s1741_s0, 2  ;;  %v1668_v0 = vmov 0   ;;  %v1428_v1 = vld [vmem:[%s2033_s2 + $0x4] ss:$8 sps:$4 sm:$0xff]   ;;  %v1430_v2 = vld [vmem:[%s2033_s2] ss:$8 sps:$4 sm:$0xff]   ;;  %v353_v25 = vlaneseq }
  0x53   : > { %1641 = vsyncadd (%p2052_p9), [#allocation7], 4294965248  ;;  %432 = vmatprep.mubr.bf16.mxu0 %v1668_v0  ;;  %p332_p12 = scmp.lt.s32.totalorder %s1247_s21, 7  ;;  %400 = vmatprep.subr.bf16.mxu0 %v1428_v1  ;;  %v1431_v3 = vld [vmem:[%s2033_s2 + $0x14] ss:$8 sps:$4 sm:$0xff]   ;;  %vm393_vm0 = vcmask 261120  }
  0x54   : > { %401 = vmatpush1.bf16.msra.mxu0 %v1430_v2  ;;  %v1433_v4 = vld [vmem:[%s2033_s2 + $0x10] ss:$8 sps:$4 sm:$0xff]   ;;  %v1436_v7 = vld [vmem:[#allocation3 + $0x4] ss:$8 sps:$4 sm:$0xff]   ;;  %v1438_v8 = vld [vmem:[#allocation3] ss:$8 sps:$4 sm:$0xff]  }
  0x55   : > { %s2061_s21 = smov (!%p332_p12, %s1247_s21), 7  ;;  %402 = vmatprep.subr.bf16.mxu0 %v1431_v3  ;;  %v1439_v9 = vld [vmem:[#allocation3 + $0x14] ss:$8 sps:$4 sm:$0xff]   ;;  %750 = vmatprep.subr.bf16.mxu1 %v1436_v7  ;;  %v1441_v10 = vld [vmem:[#allocation3 + $0x10] ss:$8 sps:$4 sm:$0xff]   ;;  %v1856_v26 = vshrl.u32 %v353_v25, 7 }
  0x56   : > { %s1248_s18 = sshll.u32 %s2061_s21, 2  ;;  %751 = vmatpush1.bf16.msra.mxu1 %v1438_v8  ;;  %v1442_v11 = vld [vmem:[#allocation3 + $0x24] ss:$8 sps:$4 sm:$0xff]   ;;  %v1444_v12 = vld [vmem:[#allocation3 + $0x20] ss:$8 sps:$4 sm:$0xff]   ;;  %s339_s23 = sld [smem:[#allocation2]] }
  0x57   : > { %s335_s13 = scalar_lea.vmem %s2032_s1, %s1248_s18  ;;  %752 = vmatprep.subr.bf16.mxu1 %v1439_v9  ;;  %v1445_v13 = vld [vmem:[#allocation3 + $0x34] ss:$8 sps:$4 sm:$0xff]   ;;  %v1447_v14 = vld [vmem:[#allocation3 + $0x30] ss:$8 sps:$4 sm:$0xff]   ;;  %v1448_v15 = vld [vmem:[#allocation3 + $0x44] ss:$8 sps:$4 sm:$0xff]  }
  0x58   : > { %v1434_v5 = vld [vmem:[%s335_s13] sm:$0xff]   ;;  %403 = vmatpush1.bf16.msra.mxu0 %v1433_v4  ;;  %v1435_v6 = vld [vmem:[%s335_s13 + $0x8] sm:$0xff]   ;;  %v1451_v17 = vld [vmem:[#allocation3 + $0x54] ss:$8 sps:$4 sm:$0xff]   ;;  %v355_v27 = vsub.s32 0, %v1856_v26  ;;  %v359_v29 = vsub.s32 1, %v1856_v26 }
  0x59   : > { %v1450_v16 = vld [vmem:[#allocation3 + $0x40] ss:$8 sps:$4 sm:$0xff]   ;;  %v1453_v18 = vld [vmem:[#allocation3 + $0x50] ss:$8 sps:$4 sm:$0xff]   ;;  %v1454_v19 = vld [vmem:[#allocation3 + $0x64] ss:$8 sps:$4 sm:$0xff]  }
  0x5a   : > { %753 = vmatpush1.bf16.msra.mxu1 %v1441_v10  ;;  %v1456_v20 = vld [vmem:[#allocation3 + $0x60] ss:$8 sps:$4 sm:$0xff]   ;;  %v1457_v21 = vld [vmem:[#allocation3 + $0x74] ss:$8 sps:$4 sm:$0xff]   ;;  %v1459_v22 = vld [vmem:[#allocation3 + $0x70] ss:$8 sps:$4 sm:$0xff]  }
  0x5b   : > { %1255 = vmatmul.mubr.msk.bf16.vlgmr.msra.gmra.mrb[0].mxu0 %vm393_vm0, %v1434_v5  ;;  %754 = vmatprep.subr.bf16.mxu1 %v1442_v11  ;;  %v1460_v23 = vld [vmem:[#allocation3 + $0x84] ss:$8 sps:$4 sm:$0xff]   ;;  %v1462_v24 = vld [vmem:[#allocation3 + $0x80] ss:$8 sps:$4 sm:$0xff]   ;;  %v1463_v8 = vld [vmem:[#allocation3 + $0x94] ss:$8 sps:$4 sm:$0xff]  }
  0x5c   : > { %442 = vmatprep.mubr.bf16.mxu0 %v1668_v0  ;;  %v351_v28 = vld [vmem:[%s2034_s3] sm:$0x3]  ;;  %v1465_v9 = vld [vmem:[#allocation3 + $0x90] ss:$8 sps:$4 sm:$0xff]   ;;  %v1466_v10 = vld [vmem:[#allocation3 + $0xa4] ss:$8 sps:$4 sm:$0xff]  }
  0x5d   : > { %v356_v30 = vrot.slane %v351_v28, %v355_v27  ;;  %v360_v31 = vrot.slane %v351_v28, %v359_v29  ;;  %v1468_v11 = vld [vmem:[#allocation3 + $0xa0] ss:$8 sps:$4 sm:$0xff]   ;;  %s328_s28 = sand.u32 1, %s1652_s30   ;;  %s1319_s14 = sshll.u32 %s1741_s0, 8 }
  0x5e   : > { %755 = vmatpush1.bf16.msra.mxu1 %v1444_v12  ;;  %v1469_v12 = vld [vmem:[#allocation3 + $0xb4] ss:$8 sps:$4 sm:$0xff]   ;;  %s1246_s11 = sshll.u32 %s328_s28, 4  ;;  %s1986_s22 = scalar_lea.hbm %s2039_s8, %s1319_s14 }
  0x5f   : > { %756 = vmatprep.subr.bf16.mxu1 %v1445_v13  ;;  %v1471_v13 = vld [vmem:[#allocation3 + $0xb0] ss:$8 sps:$4 sm:$0xff]   ;;  %s330_s13 = scalar_lea.vmem [#allocation8], %s1246_s11  ;;  %s1990_s24 = scalar_lea.sflag [#allocation5], %s328_s28 }
  0x60   : > { %s1154_s20 = sshll.u32 %s330_s13, 4  ;;  %p2053_p1 = scmp.ne.s32.totalorder %s2044_s16, 0  ;;  %s1988_s20 = int_to_ptr.vmem [resolvable:$true] %s1154_s20 }
  0x61   : > { %s1590_s21 = scalar_lea.vmem %s1988_s20, 256  ;;  %s1669_s0 = smov [#allocation8]  }
  0x62   : > { %757 = vmatpush1.bf16.msra.mxu1 %v1447_v14  ;;  %v1472_v14 = vld [vmem:[#allocation3 + $0xc4] ss:$8 sps:$4 sm:$0xff]   ;;  %p1591_p10 = scmp.ne.s32.totalorder %s1988_s20, %s1590_s21  ;;  %s1594_s18 = sshll.u32 %s1669_s0, 4  ;;  %s1595_s18 = int_to_ptr.vmem [resolvable:$false] %s1594_s18 }
  0x63   : > { %1256 = vmatmul.mubr.msk.bf16.gmra.mrb[4].mxu0 %vm393_vm0, %v1435_v6  ;;  %758 = vmatprep.subr.bf16.mxu1 %v1448_v15  ;;  %v1474_v15 = vld [vmem:[#allocation3 + $0xc0] ss:$8 sps:$4 sm:$0xff]   ;;  %p1597_p4 = scmp.lt.s32.totalorder %s1988_s20, %s1595_s18 }
  0x64   : > { %p1592_p2 = pnand %p1591_p10, %p2053_p1 }
  0x66   : > { %759 = vmatpush1.bf16.msra.mxu1 %v1450_v16  ;;  %v1475_v16 = vld [vmem:[#allocation3 + $0xd4] ss:$8 sps:$4 sm:$0xff]   ;;  %p1593_p3 = pneg %p1592_p2 }
  0x67   : > { %760 = vmatprep.subr.bf16.mxu1 %v1451_v17  ;;  %v1477_v17 = vld [vmem:[#allocation3 + $0xd0] ss:$8 sps:$4 sm:$0xff]  }
  0x6a   : > { %761 = vmatpush1.bf16.msra.mxu1 %v1453_v18  ;;  %v1478_v18 = vld [vmem:[#allocation3 + $0xe4] ss:$8 sps:$4 sm:$0xff]  }
  0x6b   : > { %762 = vmatprep.subr.bf16.mxu1 %v1454_v19  ;;  %v1480_v19 = vld [vmem:[#allocation3 + $0xe0] ss:$8 sps:$4 sm:$0xff]  }
  0x6e   : > { %763 = vmatpush1.bf16.msra.mxu1 %v1456_v20  ;;  %v1481_v20 = vld [vmem:[#allocation3 + $0xf4] ss:$8 sps:$4 sm:$0xff]  }
  0x6f   : > { %764 = vmatprep.subr.bf16.mxu1 %v1457_v21  ;;  %v1483_v21 = vld [vmem:[#allocation3 + $0xf0] ss:$8 sps:$4 sm:$0xff]  }
  0x72   : > { %765 = vmatpush1.bf16.msra.mxu1 %v1459_v22 }
  0x73   : > { %766 = vmatprep.subr.bf16.mxu1 %v1460_v23 }
  0x76   : > { %767 = vmatpush1.bf16.msra.mxu1 %v1462_v24 }
  0x77   : > { %768 = vmatprep.subr.bf16.mxu1 %v1463_v8 }
  0x7a   : > { %769 = vmatpush1.bf16.msra.mxu1 %v1465_v9 }
  0x7b   : > { %770 = vmatprep.subr.bf16.mxu1 %v1466_v10 }
  0x7e   : > { %771 = vmatpush1.bf16.msra.mxu1 %v1468_v11 }
  0x7f   : > { %772 = vmatprep.subr.bf16.mxu1 %v1469_v12 }
  0x82   : > { %773 = vmatpush1.bf16.msra.mxu1 %v1471_v13 }
  0x83   : > { %774 = vmatprep.subr.bf16.mxu1 %v1472_v14 }
  0x86   : > { %775 = vmatpush1.bf16.msra.mxu1 %v1474_v15 }
  0x87   : > { %776 = vmatprep.subr.bf16.mxu1 %v1475_v16 }
  0x8a   : > { %777 = vmatpush1.bf16.msra.mxu1 %v1477_v17 }
  0x8b   : > { %778 = vmatprep.subr.bf16.mxu1 %v1478_v18 }
  0x8e   : > { %779 = vmatpush1.bf16.msra.mxu1 %v1480_v19 }
  0x8f   : > { %780 = vmatprep.subr.bf16.mxu1 %v1481_v20 }
  0x92   : > { %781 = vmatpush1.bf16.msra.mxu1 %v1483_v21 }
 0x12e   : > { %v434_v32 = vpop.f32.mrb[0].mxu0 }
 0x12f   : > { %v435_v33 = vadd.f32 %v434_v32, %v356_v30  ;;  %v436_v34 = vpop.f32.mrb[1].mxu0 }
 0x130   : > { %v437_v35 = vadd.f32 %v436_v34, %v360_v31  ;;  %v438_v36 = vpop.f32.mrb[2].mxu0 }
 0x131   : > { %v1867_v37 = vmax.f32 %v435_v33, 0.0  ;;  %v439_v38 = vadd.f32 %v438_v36, %v356_v30  ;;  %v440_v39 = vpop.f32.mrb[3].mxu0 }
 0x132   : > { %v1869_v40 = vmax.f32 %v437_v35, 0.0  ;;  %v441_v41 = vadd.f32 %v440_v39, %v360_v31 }
 0x133   : > { %v1871_v42 = vmax.f32 %v439_v38, 0.0  ;;  %v478_v43 = vmul.f32 %v1867_v37, %v1867_v37 }
 0x134   : > { %v1875_v44 = vmax.f32 %v441_v41, 0.0  ;;  %v461_v45 = vadd.f32 %v1869_v40, %v1867_v37  ;;  %v479_v46 = vmul.f32 %v1869_v40, %v1869_v40 }
 0x135   : > { %v480_v49 = vmul.f32 %v1871_v42, %v1871_v42 }
 0x136   : > { %v444_v47 = vpop.f32.mrb[4].mxu0  ;;  %462 = vadd.xlane.f32.xlu0 %v461_v45  ;;  %v486_v48 = vadd.f32 %v479_v46, %v478_v43  ;;  %v481_v50 = vmul.f32 %v1875_v44, %v1875_v44  ;;  %v464_v55 = vadd.f32 %v1875_v44, %v1871_v42 }
 0x137   : > { %v445_v51 = vadd.f32 %v444_v47, %v356_v30  ;;  %v446_v52 = vpop.f32.mrb[5].mxu0 }
 0x138   : > { %v447_v53 = vadd.f32 %v446_v52, %v360_v31  ;;  %v448_v54 = vpop.f32.mrb[6].mxu0  ;;  %487 = vadd.xlane.f32.xlu1 %v486_v48  ;;  %v489_v61 = vadd.f32 %v481_v50, %v480_v49 }
 0x139   : > { %v1887_v56 = vmax.f32 %v445_v51, 0.0  ;;  %v449_v57 = vadd.f32 %v448_v54, %v356_v30  ;;  %v450_v58 = vpop.f32.mrb[7].mxu0 }
 0x13a   : > { %v1889_v59 = vmax.f32 %v447_v53, 0.0  ;;  %v451_v60 = vadd.f32 %v450_v58, %v360_v31  ;;  %465 = vadd.xlane.f32.xlu0 %v464_v55 }
 0x13b   : > { %v1891_v62 = vmax.f32 %v449_v57, 0.0  ;;  %v482_v1 = vmul.f32 %v1887_v56, %v1887_v56 }
 0x13c   : > { %v1893_v63 = vmax.f32 %v451_v60, 0.0  ;;  %490 = vadd.xlane.f32.xlu1 %v489_v61  ;;  %v467_v0 = vadd.f32 %v1889_v59, %v1887_v56  ;;  %v483_v2 = vmul.f32 %v1889_v59, %v1889_v59 }
 0x13d   : > { %v484_v4 = vmul.f32 %v1891_v62, %v1891_v62 }
 0x13e   : > { %468 = vadd.xlane.f32.xlu0 %v467_v0  ;;  %v470_v3 = vadd.f32 %v1893_v63, %v1891_v62  ;;  %v485_v5 = vmul.f32 %v1893_v63, %v1893_v63  ;;  %v492_v6 = vadd.f32 %v483_v2, %v482_v1 }
 0x140   : > { %471 = vadd.xlane.f32.xlu1 %v470_v3  ;;  %v495_v7 = vadd.f32 %v485_v5, %v484_v4 }
 0x142   : > { %493 = vadd.xlane.f32.xlu0 %v492_v6 }
 0x144   : > { %496 = vadd.xlane.f32.xlu1 %v495_v7 }
 0x1c3   : > { %v463_v22 = vpop.xlane.xlu0 %462 }
 0x1c4   : > { %v474_v23 = vmul.f32 0.00390625, %v463_v22 }
 0x1c5   : > { %v488_v24 = vpop.xlane.xlu1 %487 }
 0x1c6   : > { %v498_v25 = vmul.f32 0.00390625, %v488_v24  ;;  %v502_v28 = vmul.f32 %v474_v23, %v474_v23  ;;  %v510_v60 = vsub.f32 %v1867_v37, %v474_v23  ;;  %v511_v61 = vsub.f32 %v1869_v40, %v474_v23 }
 0x1c7   : > { %v466_v30 = vpop.xlane.xlu0 %465 }
 0x1c8   : > { %v506_v31 = vsub.f32 %v498_v25, %v502_v28  ;;  %v475_v32 = vmul.f32 0.00390625, %v466_v30 }
 0x1c9   : > { %v491_v33 = vpop.xlane.xlu1 %490 }
 0x1ca   : > { %v518_v34 = vadd.f32 1e-05, %v506_v31  ;;  %v499_v35 = vmul.f32 0.00390625, %v491_v33  ;;  %v503_v36 = vmul.f32 %v475_v32, %v475_v32  ;;  %v512_v0 = vsub.f32 %v1871_v42, %v475_v32  ;;  %v1485_v33 = vld [vmem:[#allocation6] sm:$0xff]  }
 0x1cb   : > { %v469_v38 = vpop.xlane.xlu0 %468  ;;  %v513_v1 = vsub.f32 %v1875_v44, %v475_v32  ;;  %v1484_v32 = vld [vmem:[#allocation6 + $0x40] sm:$0xff]  }
 0x1cc   : > { %1500 = vrsqrt.f32 %v518_v34  ;;  %v507_v39 = vsub.f32 %v499_v35, %v503_v36  ;;  %v476_v41 = vmul.f32 0.00390625, %v469_v38  ;;  %1331 = vmatprep.subr.bf16.mxu0 %v1484_v32  ;;  %v578_v34 = vld [vmem:[%s2036_s5] sm:$0x3] }
 0x1cd   : > { %v472_v43 = vpop.xlane.xlu1 %471  ;;  %1332 = vmatpush3.bf16.msra.mxu0 %v1485_v33  ;;  %v583_v35 = vrot.slane %v578_v34, %v355_v27  ;;  %v587_v36 = vrot.slane %v578_v34, %v359_v29 }
 0x1ce   : > { %v519_v45 = vadd.f32 1e-05, %v507_v39  ;;  %v477_v46 = vmul.f32 0.00390625, %v472_v43  ;;  %v504_v48 = vmul.f32 %v476_v41, %v476_v41  ;;  %v514_v11 = vsub.f32 %v1887_v56, %v476_v41 }
 0x1cf   : > { %v494_v47 = vpop.xlane.xlu0 %493  ;;  %v515_v12 = vsub.f32 %v1889_v59, %v476_v41 }
 0x1d0   : > { %1502 = vrsqrt.f32 %v519_v45  ;;  %v500_v49 = vmul.f32 0.00390625, %v494_v47  ;;  %v505_v52 = vmul.f32 %v477_v46, %v477_v46  ;;  %v516_v16 = vsub.f32 %v1891_v62, %v477_v46 }
 0x1d1   : > { %v497_v50 = vpop.xlane.xlu1 %496  ;;  %v517_v17 = vsub.f32 %v1893_v63, %v477_v46 }
 0x1d2   : > { %v508_v51 = vsub.f32 %v500_v49, %v504_v48  ;;  %v501_v53 = vmul.f32 0.00390625, %v497_v50 }
 0x1d4   : > { %v520_v54 = vadd.f32 1e-05, %v508_v51  ;;  %v509_v55 = vsub.f32 %v501_v53, %v505_v52 }
 0x1d6   : > { %v1501_v57 = vpop.eup %1500  ;;  %1504 = vrsqrt.f32 %v520_v54  ;;  %v521_v58 = vadd.f32 1e-05, %v509_v55 }
 0x1d7   : > { %v527_v2 = vmul.f32 %v1501_v57, %v511_v61  ;;  %v526_v3 = vmul.f32 %v1501_v57, %v510_v60 }
 0x1d8   : > { %1506 = vrsqrt.f32 %v521_v58 }
 0x1d9   : > { %v535_v7 = vmax.f32 %v527_v2, 0.0  ;;  %v534_v9 = vmax.f32 %v526_v3, 0.0 }
 0x1da   : > { %v1503_v4 = vpop.eup %1502 }
 0x1db   : > { %v529_v5 = vmul.f32 %v1503_v4, %v513_v1  ;;  %v528_v6 = vmul.f32 %v1503_v4, %v512_v0 }
 0x1dd   : > { %v537_v8 = vmax.f32 %v529_v5, 0.0  ;;  %v536_v10 = vmax.f32 %v528_v6, 0.0 }
 0x1df   : > { %v543_v13 = vpack.c.bf16 %v537_v8, %v535_v7  ;;  %v542_v14 = vpack.c.bf16 %v536_v10, %v534_v9  ;;  %v1486_v10 = vld [vmem:[#allocation6 + $0x48] sm:$0xff]  }
 0x1e0   : > { %v1505_v15 = vpop.eup %1504  ;;  %1333 = vmatprep.subr.bf16.mxu0 %v1486_v10 }
 0x1e1   : > { %782 = vmatprep.mubr.bf16.mxu1 %v543_v13  ;;  %v531_v18 = vmul.f32 %v1505_v15, %v515_v12  ;;  %v530_v19 = vmul.f32 %v1505_v15, %v514_v11  ;;  %v1487_v11 = vld [vmem:[#allocation6 + $0x8] sm:$0xff]   ;;  %v1488_v12 = vld [vmem:[#allocation6 + $0x50] sm:$0xff]   ;;  %v1491_v15 = vld [vmem:[#allocation6 + $0x18] sm:$0xff]  }
 0x1e2   : > { %v1507_v20 = vpop.eup %1506  ;;  %783 = vmatmul.mubr.bf16.vlgmr.msra.gmra.mrb[0].mxu1 %v542_v14  ;;  %1334 = vmatpush3.bf16.msra.mxu0 %v1487_v11  ;;  %v1489_v13 = vld [vmem:[#allocation6 + $0x10] sm:$0xff]   ;;  %v1490_v14 = vld [vmem:[#allocation6 + $0x58] sm:$0xff]  }
 0x1e3   : > { %v533_v21 = vmul.f32 %v1507_v20, %v517_v17  ;;  %v532_v22 = vmul.f32 %v1507_v20, %v516_v16  ;;  %v539_v23 = vmax.f32 %v531_v18, 0.0  ;;  %v538_v25 = vmax.f32 %v530_v19, 0.0  ;;  %1335 = vmatprep.subr.bf16.mxu0 %v1488_v12  ;;  %v1492_v16 = vld [vmem:[#allocation6 + $0x60] sm:$0xff]   ;;  %v1494_v18 = vld [vmem:[#allocation6 + $0x68] sm:$0xff]   ;;  %v1496_v20 = vld [vmem:[#allocation6 + $0x70] sm:$0xff]  }
 0x1e4   : > { %v1493_v17 = vld [vmem:[#allocation6 + $0x20] sm:$0xff]   ;;  %v1495_v19 = vld [vmem:[#allocation6 + $0x28] sm:$0xff]  }
 0x1e5   : > { %v541_v24 = vmax.f32 %v533_v21, 0.0  ;;  %v540_v28 = vmax.f32 %v532_v22, 0.0  ;;  %v1497_v21 = vld [vmem:[#allocation6 + $0x30] sm:$0xff]   ;;  %v1498_v22 = vld [vmem:[#allocation6 + $0x78] sm:$0xff]  }
 0x1e6   : > { %1336 = vmatpush3.bf16.msra.mxu0 %v1489_v13 }
 0x1e7   : > { %v545_v30 = vpack.c.bf16 %v541_v24, %v539_v23  ;;  %v544_v31 = vpack.c.bf16 %v540_v28, %v538_v25  ;;  %1337 = vmatprep.subr.bf16.mxu0 %v1490_v14  ;;  %v1499_v23 = vld [vmem:[#allocation6 + $0x38] sm:$0xff]   ;;  %v340_v24 = vstv %s339_s23  ;;  %s1596_s23 = scalar_lea.vmem %s1595_s18, 512 }
 0x1e8   : > { %1508 = vrcp.f32 %v340_v24  ;;  %p1598_p7 = scmp.lt.s32.totalorder %s1596_s23, %s1590_s21 }
 0x1e9   : > { %792 = vmatprep.mubr.bf16.mxu1 %v545_v30 }
 0x1ea   : > { %793 = vmatmul.mubr.bf16.gmra.mrb[4].mxu1 %v544_v31  ;;  %1338 = vmatpush3.bf16.msra.mxu0 %v1491_v15  ;;  %p1599_p8 = por %p1598_p7, %p1597_p4 }
 0x1eb   : > { %1339 = vmatprep.subr.bf16.mxu0 %v1492_v16 }
 0x1ec   : > { %p1600_p11 = pnand %p1599_p8, %p1593_p3 }
 0x1ee   : > { %1340 = vmatpush3.bf16.msra.mxu0 %v1493_v17 }
 0x1ef   : > { %1341 = vmatprep.subr.bf16.mxu0 %v1494_v18 }
 0x1f2   : > { %1342 = vmatpush3.bf16.msra.mxu0 %v1495_v19  ;;  %v1509_v25 = vpop.eup %1508 }
 0x1f3   : > { %1343 = vmatprep.subr.bf16.mxu0 %v1496_v20  ;;  %1359 = vpush %v1509_v25 }
 0x1f6   : > { %1344 = vmatpush3.bf16.msra.mxu0 %v1497_v21 }
 0x1f7   : > { %1345 = vmatprep.subr.bf16.mxu0 %v1498_v22 }
 0x1fa   : > { %1346 = vmatpush3.bf16.msra.mxu0 %v1499_v23 }
 0x224   : > { %s1360_s25 = spop %1359 }
 0x2b5   : > { %v784_v38 = vpop.f32.mrb[0].mxu1 }
 0x2b6   : > { %v785_v39 = vadd.f32 %v784_v38, %v583_v35  ;;  %v786_v41 = vpop.f32.mrb[1].mxu1 }
 0x2b7   : > { %v787_v43 = vadd.f32 %v786_v41, %v587_v36  ;;  %v788_v45 = vpop.f32.mrb[2].mxu1 }
 0x2b8   : > { %v1923_v46 = vadd.f32 %v785_v39, %v1867_v37  ;;  %v789_v47 = vadd.f32 %v788_v45, %v583_v35  ;;  %v790_v48 = vpop.f32.mrb[3].mxu1 }
 0x2b9   : > { %v1926_v49 = vadd.f32 %v787_v43, %v1869_v40  ;;  %v791_v50 = vadd.f32 %v790_v48, %v587_v36 }
 0x2ba   : > { %v1929_v51 = vadd.f32 %v789_v47, %v1871_v42  ;;  %v827_v29 = vmul.f32 %v1923_v46, %v1923_v46 }
 0x2bb   : > { %v1932_v26 = vadd.f32 %v791_v50, %v1875_v44  ;;  %v811_v27 = vadd.f32 %v1926_v49, %v1923_v46  ;;  %v828_v37 = vmul.f32 %v1926_v49, %v1926_v49 }
 0x2bc   : > { %v829_v42 = vmul.f32 %v1929_v51, %v1929_v51 }
 0x2bd   : > { %812 = vadd.xlane.f32.xlu0 %v811_v27  ;;  %v794_v52 = vpop.f32.mrb[4].mxu1  ;;  %v814_v40 = vadd.f32 %v1932_v26, %v1929_v51  ;;  %v830_v44 = vmul.f32 %v1932_v26, %v1932_v26  ;;  %v835_v58 = vadd.f32 %v828_v37, %v827_v29 }
 0x2be   : > { %v795_v53 = vadd.f32 %v794_v52, %v583_v35  ;;  %v796_v54 = vpop.f32.mrb[5].mxu1 }
 0x2bf   : > { %v797_v55 = vadd.f32 %v796_v54, %v587_v36  ;;  %815 = vadd.xlane.f32.xlu1 %v814_v40  ;;  %v798_v57 = vpop.f32.mrb[6].mxu1  ;;  %v838_v3 = vadd.f32 %v830_v44, %v829_v42 }
 0x2c0   : > { %v1947_v60 = vadd.f32 %v795_v53, %v1887_v56  ;;  %v799_v61 = vadd.f32 %v798_v57, %v583_v35  ;;  %v800_v0 = vpop.f32.mrb[7].mxu1 }
 0x2c1   : > { %v1950_v1 = vadd.f32 %v797_v55, %v1889_v59  ;;  %v801_v2 = vadd.f32 %v800_v0, %v587_v36  ;;  %836 = vadd.xlane.f32.xlu0 %v835_v58 }
 0x2c2   : > { %v1953_v4 = vadd.f32 %v799_v61, %v1891_v62  ;;  %v831_v56 = vmul.f32 %v1947_v60, %v1947_v60 }
 0x2c3   : > { %v1956_v5 = vadd.f32 %v801_v2, %v1893_v63  ;;  %839 = vadd.xlane.f32.xlu1 %v838_v3  ;;  %v817_v6 = vadd.f32 %v1950_v1, %v1947_v60  ;;  %v832_v59 = vmul.f32 %v1950_v1, %v1950_v1 }
 0x2c4   : > { %v833_v62 = vmul.f32 %v1953_v4, %v1953_v4 }
 0x2c5   : > { %818 = vadd.xlane.f32.xlu0 %v817_v6  ;;  %v820_v7 = vadd.f32 %v1956_v5, %v1953_v4  ;;  %v834_v63 = vmul.f32 %v1956_v5, %v1956_v5  ;;  %v841_v8 = vadd.f32 %v832_v59, %v831_v56 }
 0x2c7   : > { %821 = vadd.xlane.f32.xlu1 %v820_v7  ;;  %v844_v9 = vadd.f32 %v834_v63, %v833_v62 }
 0x2c9   : > { %842 = vadd.xlane.f32.xlu0 %v841_v8 }
 0x2cb   : > { %845 = vadd.xlane.f32.xlu1 %v844_v9 }
 0x34a   : > { %v813_v28 = vpop.xlane.xlu0 %812 }
 0x34b   : > { %v823_v30 = vmul.f32 0.00390625, %v813_v28 }
 0x34c   : > { %v816_v31 = vpop.xlane.xlu1 %815 }
 0x34d   : > { %v824_v32 = vmul.f32 0.00390625, %v816_v31  ;;  %v851_v34 = vmul.f32 %v823_v30, %v823_v30  ;;  %v859_v61 = vsub.f32 %v1923_v46, %v823_v30  ;;  %v860_v0 = vsub.f32 %v1926_v49, %v823_v30 }
 0x34e   : > { %v837_v33 = vpop.xlane.xlu0 %836  ;;  %v1079_v31 = vstv %s1360_s25 }
 0x34f   : > { %v847_v35 = vmul.f32 0.00390625, %v837_v33  ;;  %v852_v39 = vmul.f32 %v824_v32, %v824_v32  ;;  %v861_v3 = vsub.f32 %v1929_v51, %v824_v32  ;;  %v862_v6 = vsub.f32 %v1932_v26, %v824_v32 }
 0x350   : > { %v840_v36 = vpop.xlane.xlu1 %839 }
 0x351   : > { %v855_v38 = vsub.f32 %v847_v35, %v851_v34  ;;  %v848_v41 = vmul.f32 0.00390625, %v840_v36 }
 0x352   : > { %v819_v43 = vpop.xlane.xlu0 %818 }
 0x353   : > { %v867_v45 = vadd.f32 1e-05, %v855_v38  ;;  %v856_v47 = vsub.f32 %v848_v41, %v852_v39  ;;  %v825_v48 = vmul.f32 0.00390625, %v819_v43 }
 0x354   : > { %v822_v50 = vpop.xlane.xlu1 %821 }
 0x355   : > { %1510 = vrsqrt.f32 %v867_v45  ;;  %v868_v27 = vadd.f32 1e-05, %v856_v47  ;;  %v826_v29 = vmul.f32 0.00390625, %v822_v50  ;;  %v853_v52 = vmul.f32 %v825_v48, %v825_v48 }
 0x356   : > { %v843_v37 = vpop.xlane.xlu0 %842  ;;  %v863_v12 = vsub.f32 %v1947_v60, %v825_v48  ;;  %v864_v46 = vsub.f32 %v1950_v1, %v825_v48 }
 0x357   : > { %1512 = vrsqrt.f32 %v868_v27  ;;  %v849_v40 = vmul.f32 0.00390625, %v843_v37  ;;  %v854_v53 = vmul.f32 %v826_v29, %v826_v29  ;;  %v865_v51 = vsub.f32 %v1953_v4, %v826_v29  ;;  %v1289_v4 = vld [vmem:[%s2038_s7] ss:$0 sm:$0xff] }
 0x358   : > { %v846_v42 = vpop.xlane.xlu1 %845  ;;  %v866_v26 = vsub.f32 %v1956_v5, %v826_v29 }
 0x359   : > { %v857_v44 = vsub.f32 %v849_v40, %v853_v52  ;;  %v850_v54 = vmul.f32 0.00390625, %v846_v42 }
 0x35b   : > { %v869_v55 = vadd.f32 1e-05, %v857_v44  ;;  %v858_v57 = vsub.f32 %v850_v54, %v854_v53 }
 0x35d   : > { %1514 = vrsqrt.f32 %v869_v55  ;;  %v870_v58 = vadd.f32 1e-05, %v858_v57 }
 0x35f   : > { %v1511_v2 = vpop.eup %1510  ;;  %1516 = vrsqrt.f32 %v870_v58 }
 0x360   : > { %v876_v56 = vmul.f32 %v1511_v2, %v860_v0  ;;  %v875_v59 = vmul.f32 %v1511_v2, %v859_v61 }
 0x361   : > { %v1513_v7 = vpop.eup %1512 }
 0x362   : > { %v878_v62 = vmul.f32 %v1513_v7, %v862_v6  ;;  %v877_v63 = vmul.f32 %v1513_v7, %v861_v3  ;;  %v884_v8 = vmax.f32 %v876_v56, 0.0  ;;  %v883_v10 = vmax.f32 %v875_v59, 0.0 }
 0x364   : > { %v886_v9 = vmax.f32 %v878_v62, 0.0  ;;  %v885_v11 = vmax.f32 %v877_v63, 0.0 }
 0x366   : > { %v892_v49 = vpack.c.bf16 %v886_v9, %v884_v8  ;;  %v891_v13 = vpack.c.bf16 %v885_v11, %v883_v10 }
 0x367   : > { %v1515_v14 = vpop.eup %1514 }
 0x368   : > { %1062 = vmatprep.mubr.bf16.mxu0 %v892_v49  ;;  %v880_v15 = vmul.f32 %v1515_v14, %v864_v46  ;;  %v879_v16 = vmul.f32 %v1515_v14, %v863_v12 }
 0x369   : > { %v1517_v17 = vpop.eup %1516  ;;  %1063 = vmatmul.mubr.bf16.vlgmr.msra.gmra.mrb[8].mxu0 %v891_v13 }
 0x36a   : > { %v882_v18 = vmul.f32 %v1517_v17, %v866_v26  ;;  %v881_v19 = vmul.f32 %v1517_v17, %v865_v51  ;;  %v888_v20 = vmax.f32 %v880_v15, 0.0  ;;  %v887_v22 = vmax.f32 %v879_v16, 0.0 }
 0x36c   : > { %v890_v21 = vmax.f32 %v882_v18, 0.0  ;;  %v889_v60 = vmax.f32 %v881_v19, 0.0 }
 0x36e   : > { %v894_v23 = vpack.c.bf16 %v890_v21, %v888_v20  ;;  %v893_v1 = vpack.c.bf16 %v889_v60, %v887_v22 }
 0x370   : > { %1070 = vmatprep.mubr.bf16.mxu0 %v894_v23 }
 0x371   : > { %1071 = vmatmul.mubr.bf16.gmra.mrb[12].mxu0 %v893_v1 }
 0x43c   : > { %v1347_v24 = vpop.f32.mrb[8].mxu0 }
 0x43d   : > { %v1348_v5 = vpop.f32.mrb[9].mxu0 }
 0x43e   : > { %v1349_v25 = vadd.f32 %v1348_v5, %v1347_v24  ;;  %v1350_v28 = vpop.f32.mrb[10].mxu0 }
 0x43f   : > { %v1351_v30 = vpop.f32.mrb[11].mxu0 }
 0x440   : > { %v1065_v32 = vadd.f32 %v1349_v25, %v1289_v4  ;;  %v1352_v33 = vadd.f32 %v1351_v30, %v1350_v28 }
 0x442   : > { %v1068_v34 = vadd.f32 %v1352_v33, %v1289_v4  ;;  %v1080_v35 = vmul.f32 %v1079_v31, %v1065_v32 }
 0x444   : > { %v1353_v36 = vpop.f32.mrb[12].mxu0  ;;  %1084 = vmax.xlane.f32.xlu0 %v1080_v35  ;;  %v1081_v38 = vmul.f32 %v1079_v31, %v1068_v34 }
 0x445   : > { %v1354_v39 = vpop.f32.mrb[13].mxu0 }
 0x446   : > { %v1355_v41 = vadd.f32 %v1354_v39, %v1353_v36  ;;  %v1356_v43 = vpop.f32.mrb[14].mxu0  ;;  %1086 = vmax.xlane.f32.xlu1 %v1081_v38 }
 0x447   : > { %v1357_v45 = vpop.f32.mrb[15].mxu0 }
 0x448   : > { %v1073_v47 = vadd.f32 %v1355_v41, %v1289_v4  ;;  %v1358_v48 = vadd.f32 %v1357_v45, %v1356_v43 }
 0x44a   : > { %v1076_v50 = vadd.f32 %v1358_v48, %v1289_v4  ;;  %v1082_v27 = vmul.f32 %v1079_v31, %v1073_v47 }
 0x44c   : > { %1088 = vmax.xlane.f32.xlu0 %v1082_v27  ;;  %v1083_v29 = vmul.f32 %v1079_v31, %v1076_v50 }
 0x44e   : > { %1090 = vmax.xlane.f32.xlu1 %v1083_v29 }
 0x4d1   : > { %v1085_v37 = vpop.xlane.xlu0 %1084 }
 0x4d2   : > { %v1092_v52 = vsub.f32 %v1080_v35, %v1085_v37 }
 0x4d3   : > { %v1087_v40 = vpop.xlane.xlu1 %1086 }
 0x4d4   : > { %v1096_v42 = vmul.f32 1.442695, %v1092_v52  ;;  %v1093_v44 = vsub.f32 %v1081_v38, %v1087_v40 }
 0x4d6   : > { %1518 = vpow2.f32 %v1096_v42  ;;  %v1098_v53 = vmul.f32 1.442695, %v1093_v44 }
 0x4d8   : > { %1520 = vpow2.f32 %v1098_v53 }
 0x4d9   : > { %v1089_v54 = vpop.xlane.xlu0 %1088 }
 0x4da   : > { %v1094_v55 = vsub.f32 %v1082_v27, %v1089_v54 }
 0x4db   : > { %v1091_v57 = vpop.xlane.xlu1 %1090 }
 0x4dc   : > { %v1100_v58 = vmul.f32 1.442695, %v1094_v55  ;;  %v1095_v61 = vsub.f32 %v1083_v29, %v1091_v57 }
 0x4de   : > { %1522 = vpow2.f32 %v1100_v58  ;;  %v1102_v0 = vmul.f32 1.442695, %v1095_v61 }
 0x4e0   : > { %v1519_v2 = vpop.eup %1518  ;;  %1524 = vpow2.f32 %v1102_v0 }
 0x4e1   : > { %1104 = vadd.xlane.f32.xlu0 %v1519_v2 }
 0x4e2   : > { %v1521_v3 = vpop.eup %1520 }
 0x4e3   : > { %1106 = vadd.xlane.f32.xlu1 %v1521_v3 }
 0x4e8   : > { %v1523_v6 = vpop.eup %1522 }
 0x4e9   : > { %1108 = vadd.xlane.f32.xlu0 %v1523_v6 }
 0x4ea   : > { %v1525_v56 = vpop.eup %1524 }
 0x4eb   : > { %1110 = vadd.xlane.f32.xlu1 %v1525_v56 }
 0x56e   : > { %v1105_v59 = vpop.xlane.xlu0 %1104 }
 0x56f   : > { %1526 = vrcp.f32 %v1105_v59 }
 0x570   : > { %v1107_v7 = vpop.xlane.xlu1 %1106 }
 0x571   : > { %1528 = vrcp.f32 %v1107_v7 }
 0x576   : > { %v1109_v62 = vpop.xlane.xlu0 %1108 }
 0x577   : > { %1530 = vrcp.f32 %v1109_v62 }
 0x578   : > { %v1111_v63 = vpop.xlane.xlu1 %1110 }
 0x579   : > { %v1527_v8 = vpop.eup %1526  ;;  %1532 = vrcp.f32 %v1111_v63 }
 0x57a   : > { %v1116_v10 = vmul.f32 %v1527_v8, %v1519_v2 }
 0x57b   : > { %v1529_v9 = vpop.eup %1528 }
 0x57c   : > { %v1117_v11 = vmul.f32 %v1529_v9, %v1521_v3 }
 0x57e   : > { %v1323_v12 = vpack.c.bf16 %v1117_v11, %v1116_v10 }
 0x580   : > { %1324 = vst [vmem:[%s330_s13] sm:$0xff] %v1323_v12  }
 0x581   : > { %v1531_v46 = vpop.eup %1530 }
 0x582   : > { %v1118_v13 = vmul.f32 %v1531_v46, %v1523_v6 }
 0x583   : > { %v1533_v49 = vpop.eup %1532 }
 0x584   : > { %v1119_v14 = vmul.f32 %v1533_v49, %v1525_v56 }
 0x586   : > { %v1328_v51 = vpack.c.bf16 %v1119_v14, %v1118_v13 }
 0x588   : > { %1330 = vst [vmem:[%s330_s13 + $0x8] sm:$0xff] %v1328_v51  }
 0x589   : > { %1603 = shalt.err (!%p1600_p11)
}
 0x58a   : > { %s1604_s25 = scalar_lea.hbm %s1986_s22, 256  ;;  %s1608_s28 = scalar_lea.hbm %s2039_s8, 512 }
 0x58b   : > { %p1605_p13 = scmp.ne.s32.totalorder %s1986_s22, %s1604_s25  ;;  %p1609_p6 = scmp.lt.u32.totalorder %s1986_s22, %s2039_s8 }
 0x58c   : > { %p1610_p9 = scmp.lt.u32.totalorder %s1608_s28, %s1604_s25  ;;  %p1612_p10 = scmp.lt.u32.totalorder %s1604_s25, %s1986_s22 }
 0x58d   : > { %p1606_p0 = pnand %p1605_p13, %p2053_p1 }
 0x58e   : > { %p1611_p12 = por %p1610_p9, %p1609_p6 }
 0x58f   : > { %p1607_p5 = pneg %p1606_p0 }
 0x590   : > { %p1613_p2 = por %p1612_p10, %p1611_p12 }
 0x592   : > { %p1614_p3 = pnand %p1613_p2, %p1607_p5 }
 0x594   : > { %1617 = shalt.err (!%p1614_p3)
}
 0x595   : > { %s1670_s14 = smov 64   ;;  %s1671_s15 = smov 4  }
 0x596   : > { %1369 = dma.vmem_to_hbm [thread:$0]  (%p2053_p1), %s1988_s20, 256, %s1986_s22, %s1990_s24, %s1670_s14, %s1670_s14, %s1671_s15  }
 0x597 PF: > { %p1386_p4 = scmp.ge.s32.totalorder %s1660_s10, 2  ;;  %s1169_s19 = sand.u32 1, %s1648_s29  }
 0x598   : > { %p2054_p7 = scmp.ne.s32.totalorder %s2045_s17, 0  ;;  %s1170_s21 = scalar_lea.sflag [#allocation5], %s1169_s19 }
 0x59a   : > { %p1379_p8 = pnand %p1386_p4, %p2054_p7 }
 0x59c   : > { %1643 = dma.done.wait (!%p1379_p8), %s1170_s21, 256  }
 0x59d   : > { %1645 = vsyncadd (!%p1379_p8), %s1170_s21, 4294967040  ;;  %s2055_s0 = sld [smem:[#allocation12_spill]]  ;;  %p21_p11 = scmp.ge.s32.totalorder %s1745_s12, 4  }
 0x59e   : > { %s2056_s29 = smov %s1652_s30  ;;  %s2057_s30 = smov %s1656_s9 }
 0x59f   : > { %s2059_s10 = smov %s1745_s12  ;;  %23 = sbr.rel (!%p21_p11) target bundleno = 7 (0x7), region = 96 }
 0x5a3   : > { %s2058_s9 = smov %s2055_s0 }
 0x5a6   :  { %1175 = vsyncpa [#allocation4], 1 }
 0x5a7   :  { %1177 = vsyncpa [#allocation4 + $0x1], 1 }
 0x5a8   :  { %1178 = vsyncpa [#allocation7], 1 }
 0x5a9   :  { %1179 = vsyncpa [#allocation5], 1 }
 0x5aa   :  { %1181 = vsyncpa [#allocation5 + $0x1], 1 }

</bundles_post_ra>
